<compile_context>
chip_gen: v7x
topology: tpu7x:2x2x1
jax: 0.10.0
libtpu: 0.0.40
codegen_flags: <defaults>
</compile_context>

<pallas_src>
import math

import jax
import jax.numpy as jnp
from jax.experimental import pallas as pl
from jax.experimental.pallas import tpu as pltpu


def _round_up(x: int, m: int) -> int:
    return (x + m - 1) // m * m


def fused_linear_kernel(x_ref, w_ref, b_ref, o_ref):
    # x_ref: (tm, K) f32 | w_ref: (K, Npad) bf16 | b_ref: (1, Npad) f32
    # o_ref: (tm, Npad) bf16
    x_bf16 = x_ref[...].astype(jnp.bfloat16)          # cast in-kernel (VPU slack, free)
    acc = jnp.dot(x_bf16, w_ref[...], preferred_element_type=jnp.float32)
    o_ref[...] = (acc + b_ref[...]).astype(o_ref.dtype)


def prepare_params(w1, b1, w2, b2, *, lane=128):
    """One-time parameter prep (hoisted out of the per-forward path).

    w1: (hidden, inf), b1: (hidden,), w2: (outf, hidden), b2: (outf,)  [PyTorch layout]
    Returns (w_fused bf16 (inf, Npad), b_fused f32 (1, Npad), outf).
    """
    _, inf = w1.shape
    outf = w2.shape[0]
    # Fuse the two linears in f32 (exact: no nonlinearity between them).
    w_fused = w1.T.astype(jnp.float32) @ w2.T.astype(jnp.float32)                 # (inf, outf)
    b_fused = b1.astype(jnp.float32) @ w2.T.astype(jnp.float32) + b2.astype(jnp.float32)
    # Pad only N (output features) to a lane-dense multiple of 128. K stays = inf.
    Npad = _round_up(outf, lane)
    w_pad = jnp.zeros((inf, Npad), jnp.float32).at[:, :outf].set(w_fused)
    b_pad = jnp.zeros((1, Npad), jnp.float32).at[0, :outf].set(b_fused)
    return w_pad.astype(jnp.bfloat16), b_pad, outf


def fashion_mnist_forward(x_nchw, w_fused, b_fused, outf, *, max_tm=1024):
    """Forward pass using prepared (fused / N-padded / bf16) parameters."""
    B = x_nchw.shape[0]
    inf = math.prod(x_nchw.shape[1:])
    K, Npad = w_fused.shape
    assert K == inf, f"prepared weights expect {K} input features, got {inf}"

    # Glue: just a reshape — no cast, no pad, no extra HBM copy.
    x2d = x_nchw.reshape(B, inf)

    # Batch tile: multiple of 16 (bf16 output sublane packing), aim for >= 2 grid steps
    # so v7x's two TensorCores both get work; cap for VMEM (fits v5e's 16 MiB default).
    tm = max(16, min(max_tm, _round_up(pl.cdiv(B, 2), 16)))
    grid = (pl.cdiv(B, tm),)   # tail block (if any) is masked by Pallas

    grid_spec = pltpu.PrefetchScalarGridSpec(
        num_scalar_prefetch=0,
        grid=grid,
        in_specs=[
            pl.BlockSpec((tm, K), lambda i: (i, 0)),     # batch-tiled f32 activations
            pl.BlockSpec((K, Npad), lambda i: (0, 0)),   # fused weights, VMEM-resident
            pl.BlockSpec((1, Npad), lambda i: (0, 0)),   # fused bias, VMEM-resident
        ],
        out_specs=pl.BlockSpec((tm, Npad), lambda i: (i, 0)),
    )

    cost = pl.CostEstimate(
        flops=2 * B * K * Npad,
        transcendentals=0,
        bytes_accessed=(B * K * 4          # f32 activations read once
                        + K * Npad * 2     # bf16 fused weights
                        + Npad * 4         # f32 fused bias
                        + B * Npad * 2),   # bf16 output writeback
    )

    out = pl.pallas_call(
        fused_linear_kernel,
        out_shape=jax.ShapeDtypeStruct((B, Npad), jnp.bfloat16),
        grid_spec=grid_spec,
        compiler_params=pltpu.CompilerParams(
            dimension_semantics=("parallel",),   # batch tiles shard across v7x's 2 TCs
        ),
        cost_estimate=cost,
    )(x2d, w_fused, b_fused)

    return out[:, :outf].astype(jnp.float32)


def fashion_mnist_model_v0(x_nchw, w1, b1, w2, b2):
    """Convenience wrapper taking raw PyTorch-layout parameters.

    NOTE: re-runs prepare_params every call; for repeated inference, call
    prepare_params once and reuse its outputs with fashion_mnist_forward.
    """
    w_fused, b_fused, outf = prepare_params(w1, b1, w2, b2)
    return fashion_mnist_forward(x_nchw, w_fused, b_fused, outf)


def init_params(key, inf, hidden, outf):
    """Deterministic init mimicking PyTorch nn.Linear default (uniform +-1/sqrt(in))."""
    k1, k2, k3, k4 = jax.random.split(key, 4)
    bound1 = 1.0 / (inf ** 0.5)
    bound2 = 1.0 / (hidden ** 0.5)
    w1 = jax.random.uniform(k1, (hidden, inf), jnp.float32, -bound1, bound1)
    b1 = jax.random.uniform(k2, (hidden,), jnp.float32, -bound1, bound1)
    w2 = jax.random.uniform(k3, (outf, hidden), jnp.float32, -bound2, bound2)
    b2 = jax.random.uniform(k4, (outf,), jnp.float32, -bound2, bound2)
    return w1, b1, w2, b2


if __name__ == "__main__":
    # Real FashionMNIST-shaped inputs, small batch: (B, 1, 28, 28), inf = 784.
    B, C, H, W = 2, 1, 28, 28
    inf, hidden, outf = C * H * W, 32, 10

    key = jax.random.PRNGKey(0)
    kx, kp = jax.random.split(key)
    x = jax.random.normal(kx, (B, C, H, W), jnp.float32)
    w1, b1, w2, b2 = init_params(kp, inf, hidden, outf)

    # Prepare parameters once (fusion / padding / bf16 cast hoisted out of forward).
    w_fused, b_fused, n_out = prepare_params(w1, b1, w2, b2)

    out = fashion_mnist_forward(x, w_fused, b_fused, n_out)
    out = jax.block_until_ready(out)

    # Reference: PyTorch semantics in plain f32 JAX.
    ref = (x.reshape(B, inf) @ w1.T + b1) @ w2.T + b2
    assert out.shape == (B, outf)
    assert out.dtype == jnp.float32
    max_err = float(jnp.max(jnp.abs(out - ref)))
    assert max_err < 5e-2, f"max abs err {max_err} (bf16 operands/output, f32 accumulation)"

    print("KERNEL_OK")
</pallas_src>

<mosaic_0001>
module attributes {stable_mosaic.version = 11 : i64} {
  func.func @fused_linear_kernel(%arg0: i32, %arg1: memref<16x784xf32, #tpu.memory_space<vmem>>, %arg2: memref<784x128xbf16, #tpu.memory_space<vmem>>, %arg3: memref<1x128xf32, #tpu.memory_space<vmem>>, %arg4: memref<16x128xbf16, #tpu.memory_space<vmem>>) attributes {dimension_semantics = [#tpu.dimension_semantics<parallel>], iteration_bounds = array<i64: 1>, scalar_prefetch = 0 : i64, scratch_operands = 0 : i64, tpu.core_type = #tpu.core_type<tc>, window_params = [{transform_indices = @transform_0, window_bounds = array<i64: 16, 784>}, {pipeline_mode = #tpu.pipeline_mode<synchronous>, transform_indices = @transform_1, window_bounds = array<i64: 784, 128>}, {pipeline_mode = #tpu.pipeline_mode<synchronous>, transform_indices = @transform_2, window_bounds = array<i64: 1, 128>}, {transform_indices = @transform_3, window_bounds = array<i64: 16, 128>}]} {
    %c0 = arith.constant 0 : index
    %c0_0 = arith.constant 0 : index
    %0 = vector.load %arg1[%c0, %c0_0] : memref<16x784xf32, #tpu.memory_space<vmem>>, vector<16x784xf32>
    %1 = arith.truncf %0 : vector<16x784xf32> to vector<16x784xbf16>
    %c0_1 = arith.constant 0 : index
    %c0_2 = arith.constant 0 : index
    %2 = vector.load %arg2[%c0_1, %c0_2] : memref<784x128xbf16, #tpu.memory_space<vmem>>, vector<784x128xbf16>
    %cst = arith.constant dense<0.000000e+00> : vector<16x128xf32>
    %3 = tpu.matmul %1, %2, %cst {dimension_numbers = #tpu.dot_dimension_numbers<[1], [0], [0], [1], [0, 0, 1, 1], [], []>} : vector<16x784xbf16>, vector<784x128xbf16>, vector<16x128xf32> -> vector<16x128xf32>
    %c0_3 = arith.constant 0 : index
    %c0_4 = arith.constant 0 : index
    %4 = vector.load %arg3[%c0_3, %c0_4] : memref<1x128xf32, #tpu.memory_space<vmem>>, vector<1x128xf32>
    %5 = vector.broadcast %4 : vector<1x128xf32> to vector<16x128xf32>
    %6 = arith.addf %3, %5 : vector<16x128xf32>
    %7 = arith.truncf %6 : vector<16x128xf32> to vector<16x128xbf16>
    %c0_5 = arith.constant 0 : index
    %c0_6 = arith.constant 0 : index
    %8 = vector.load %arg4[%c0_5, %c0_6] : memref<16x128xbf16, #tpu.memory_space<vmem>>, vector<16x128xbf16>
    tpu.vector_store %arg4[%c0_5, %c0_6], %7 {strides = array<i32>} : memref<16x128xbf16, #tpu.memory_space<vmem>>, vector<16x128xbf16>,
    return
  }
  func.func @transform_0(%arg0: i32) -> (i32, i32) {
    %c0_i32 = arith.constant 0 : i32
    %c0_i32_0 = arith.constant 0 : i32
    return %arg0, %c0_i32 : i32, i32
  }
  func.func @transform_1(%arg0: i32) -> (i32, i32) {
    %c0_i32 = arith.constant 0 : i32
    %c0_i32_0 = arith.constant 0 : i32
    %c0_i32_1 = arith.constant 0 : i32
    return %c0_i32, %c0_i32_0 : i32, i32
  }
  func.func @transform_2(%arg0: i32) -> (i32, i32) {
    %c0_i32 = arith.constant 0 : i32
    %c0_i32_0 = arith.constant 0 : i32
    %c0_i32_1 = arith.constant 0 : i32
    return %c0_i32, %c0_i32_0 : i32, i32
  }
  func.func @transform_3(%arg0: i32) -> (i32, i32) {
    %c0_i32 = arith.constant 0 : i32
    %c0_i32_0 = arith.constant 0 : i32
    return %arg0, %c0_i32 : i32, i32
  }
}

</mosaic_0001>

<bundles_post_ra>
// kernel: tpu_custom_call.1
= control target key start
LH: loop header
LB: loop body
LE: loop exit
PB: predicated region body
PF: predicated region fallthrough
CT: control target
= control target key end

     0   :  { %8 = vsyncpa [#allocation3], 0  ;;  %s1273_s0 = inlined_call_operand.hbm [shape: f32[2,784], index: 0, kind: input, shape index: {}]   ;;  %s1274_s1 = inlined_call_operand.hbm [shape: bf16[784,128], index: 1, kind: input, shape index: {}]   ;;  %s1275_s2 = inlined_call_operand.vmem [shape: f32[1,128], index: 2, kind: input, shape index: {}]   ;;  %s1276_s3 = inlined_call_operand.hbm [shape: bf16[2,128], index: 3, kind: output, shape index: {}]  }
   0x1   :  { %9 = vsyncpa [#allocation6], 0 }
   0x2   :  { %10 = vsyncpa [#allocation4], 0 }
   0x3   :  { %15 = vsyncadd [#allocation3], 1568  ;;  %s1179_s12 = smov [#allocation2]   ;;  %s1107_s16 = scalar_lea.hbm %s1273_s0, 224 }
   0x4   :  { %s16_s13 = sshll.u32 %s1179_s12, 4  ;;  %p1108_p0 = scmp.ne.s32.totalorder %s1273_s0, %s1107_s16  ;;  %s17_s13 = int_to_ptr.vmem [resolvable:$true] %s16_s13 }
   0x5   :  { %p1111_p1 = scmp.lt.u32.totalorder %s1107_s16, %s1273_s0 }
   0x7   :  { %p1113_p2 = pnand %p1111_p1, %p1108_p0 }
   0x9   :  { %1116 = shalt.err (!%p1113_p2)
}
   0xa   :  { %s1117_s21 = scalar_lea.vmem %s17_s13, 224  ;;  %s1121_s22 = scalar_lea.vmem %s17_s13, 1792 }
   0xb   :  { %p1118_p3 = scmp.ne.s32.totalorder %s17_s13, %s1117_s21  ;;  %p1122_p4 = scmp.lt.s32.totalorder %s17_s13, %s17_s13 }
   0xc   :  { %p1123_p5 = scmp.lt.s32.totalorder %s1121_s22, %s1117_s21 }
   0xe   :  { %p1124_p6 = por %p1123_p5, %p1122_p4 }
  0x10   :  { %p1125_p7 = pnand %p1124_p6, %p1118_p3 }
  0x12   :  { %1128 = shalt.err (!%p1125_p7)
}
  0x13   :  { %s1180_s23 = smov 224   ;;  %s1181_s24 = smov 14  }
  0x14   :  { %22 = dma.hbm_to_vmem [thread:$0]  %s1273_s0, 224, %s17_s13, [#allocation3], %s1180_s23, %s1180_s23, %s1181_s24  }
  0x15   :  { %s1182_s27 = smov [#allocation5]   ;;  %s1129_s4 = scalar_lea.hbm %s1274_s1, 6272 }
  0x16   :  { %s28_s28 = sshll.u32 %s1182_s27, 4  ;;  %p1130_p8 = scmp.ne.s32.totalorder %s1274_s1, %s1129_s4  ;;  %s29_s28 = int_to_ptr.vmem [resolvable:$true] %s28_s28 }
  0x17   :  { %p1133_p9 = scmp.lt.u32.totalorder %s1129_s4, %s1274_s1 }
  0x19   :  { %p1135_p10 = pnand %p1133_p9, %p1130_p8 }
  0x1b   :  { %1138 = shalt.err (!%p1135_p10)
}
  0x1c   :  { %s1139_s9 = scalar_lea.vmem %s29_s28, 6272  ;;  %p1144_p12 = scmp.lt.s32.totalorder %s29_s28, %s29_s28 }
  0x1d   :  { %p1140_p11 = scmp.ne.s32.totalorder %s29_s28, %s1139_s9  ;;  %p1145_p13 = scmp.lt.s32.totalorder %s1139_s9, %s1139_s9 }
  0x1f   :  { %p1146_p0 = por %p1145_p13, %p1144_p12 }
  0x21   :  { %p1147_p1 = pnand %p1146_p0, %p1140_p11 }
  0x23   :  { %1150 = shalt.err (!%p1147_p1)
}
  0x24   :  { %s1183_s0 = smov 64   ;;  %s1184_s10 = smov 4  }
  0x25   :  { %34 = dma.hbm_to_vmem [thread:$0]  %s1274_s1, 6272, %s29_s28, [#allocation6], %s1183_s0, %s1183_s0, %s1184_s10  }
  0x26   :  { %1173 = dma.done.wait [#allocation3], 1792  }
  0x27   :  { %1174 = vsyncadd [#allocation3], 4294965504 }
  0x28   :  { %1175 = dma.done.wait [#allocation6], 6272  }
  0x29   :  { %1176 = vsyncadd [#allocation6], 4294961024  ;;  %v1034_v0 = vld [vmem:[#allocation5 + $0x40] sm:$0xff]   ;;  %v1038_v4 = vld [vmem:[#allocation5 + $0x48] sm:$0xff]   ;;  %v1185_v24 = vmov 1983009808   ;;  %v83_v26 = vlaneseq }
  0x2a   :  { %v1035_v1 = vld [vmem:[#allocation5] sm:$0xff]   ;;  %947 = vmatprep.subr.bf16.mxu0 %v1034_v0  ;;  %v1039_v5 = vld [vmem:[#allocation5 + $0x8] sm:$0xff]   ;;  %v1042_v8 = vld [vmem:[#allocation5 + $0x50] sm:$0xff]   ;;  %v81_v25 = vunpack.c.l.s4 %v1185_v24  ;;  %v1186_v58 = vmov 0.0   ;;  %vm1187_vm0 = vmmov 0   ;;  %vm638_vm1 = vcmask 130048  }
  0x2b   :  { %v1036_v2 = vld [vmem:[#allocation5 + $0xc0] sm:$0xff]   ;;  %948 = vmatpush3.bf16.msra.mxu0 %v1035_v1  ;;  %v1040_v6 = vld [vmem:[#allocation5 + $0xc8] sm:$0xff]   ;;  %v1043_v9 = vld [vmem:[#allocation5 + $0x10] sm:$0xff]   ;;  %v1236_v32 = vshrl.u32 %v83_v26, 7 }
  0x2c   :  { %v1037_v3 = vld [vmem:[#allocation5 + $0x80] sm:$0xff]   ;;  %969 = vmatprep.subr.bf16.mxu1 %v1036_v2  ;;  %949 = vmatprep.subr.bf16.mxu0 %v1038_v4  ;;  %v1041_v7 = vld [vmem:[#allocation5 + $0x88] sm:$0xff]   ;;  %v1044_v10 = vld [vmem:[#allocation5 + $0xd0] sm:$0xff]   ;;  %v82_v31 = vunpack.c.0.s8 %v81_v25 }
  0x2d   :  { %970 = vmatpush3.bf16.msra.mxu1 %v1037_v3  ;;  %v1045_v11 = vld [vmem:[#allocation5 + $0x90] sm:$0xff]   ;;  %v1046_v12 = vld [vmem:[#allocation5 + $0x58] sm:$0xff]   ;;  %v1050_v16 = vld [vmem:[#allocation5 + $0x60] sm:$0xff]  }
  0x2e   :  { %971 = vmatprep.subr.bf16.mxu1 %v1040_v6  ;;  %v1047_v13 = vld [vmem:[#allocation5 + $0x18] sm:$0xff]   ;;  %v1051_v17 = vld [vmem:[#allocation5 + $0x20] sm:$0xff]   ;;  %v1054_v20 = vld [vmem:[#allocation5 + $0x68] sm:$0xff]   ;;  %v1239_v36 = vsub.s32 %v82_v31, %v1236_v32 }
  0x2f   :  { %950 = vmatpush3.bf16.msra.mxu0 %v1039_v5  ;;  %v1048_v14 = vld [vmem:[#allocation5 + $0xd8] sm:$0xff]   ;;  %v1052_v18 = vld [vmem:[#allocation5 + $0xe0] sm:$0xff]   ;;  %v1055_v21 = vld [vmem:[#allocation5 + $0x28] sm:$0xff]  }
  0x30   :  { %951 = vmatprep.subr.bf16.mxu0 %v1042_v8  ;;  %v1049_v15 = vld [vmem:[#allocation5 + $0x98] sm:$0xff]   ;;  %v1053_v19 = vld [vmem:[#allocation5 + $0xa0] sm:$0xff]   ;;  %v1056_v22 = vld [vmem:[#allocation5 + $0xe8] sm:$0xff]  }
  0x31   :  { %972 = vmatpush3.bf16.msra.mxu1 %v1041_v7  ;;  %v1057_v23 = vld [vmem:[#allocation5 + $0xa8] sm:$0xff]   ;;  %v1058_v27 = vld [vmem:[#allocation5 + $0x70] sm:$0xff]   ;;  %v1062_v33 = vld [vmem:[#allocation5 + $0x78] sm:$0xff]  }
  0x32   :  { %973 = vmatprep.subr.bf16.mxu1 %v1044_v10  ;;  %v1059_v28 = vld [vmem:[#allocation5 + $0x30] sm:$0xff]   ;;  %v1063_v34 = vld [vmem:[#allocation5 + $0x38] sm:$0xff]   ;;  %v1074_v46 = vld [vmem:[#allocation5 + $0x140] sm:$0xff]  }
  0x33   :  { %952 = vmatpush3.bf16.msra.mxu0 %v1043_v9  ;;  %v1060_v29 = vld [vmem:[#allocation5 + $0xf0] sm:$0xff]   ;;  %v1064_v35 = vld [vmem:[#allocation5 + $0xf8] sm:$0xff]   ;;  %v1079_v62 = vld [vmem:[#allocation5 + $0x100] sm:$0xff]  }
  0x34   :  { %953 = vmatprep.subr.bf16.mxu0 %v1046_v12  ;;  %v1061_v30 = vld [vmem:[#allocation5 + $0xb0] sm:$0xff]   ;;  %v1067_v38 = vld [vmem:[#allocation2 + $0x1c] ss:$14 sps:$4 sm:$0xff]   ;;  %v1087_v12 = vld [vmem:[#allocation5 + $0x120] sm:$0xff]  }
  0x35   :  { %974 = vmatpush3.bf16.msra.mxu1 %v1045_v11  ;;  %v1065_v37 = vld [vmem:[#allocation2] ss:$14 sps:$4 sm:$0xff]   ;;  %v1069_v39 = vld [vmem:[#allocation2 + $0x38] ss:$14 sps:$4 sm:$0xff]   ;;  %v100_v43 = vrot.slane %v1067_v38, %v1239_v36  ;;  %v1077_v49 = vld [vmem:[#allocation2 + $0x3c] ss:$14 sps:$4 sm:$0xff]  }
  0x36   :  { %975 = vmatprep.subr.bf16.mxu1 %v1048_v14  ;;  %v1071_v40 = vld [vmem:[#allocation2 + $0x54] ss:$14 sps:$4 sm:$0xff]   ;;  %v86_v41 = vrot.slane %v1065_v37, %v1239_v36  ;;  %v1073_v42 = vld [vmem:[#allocation5 + $0xb8] sm:$0xff]   ;;  %v157_v44 = vrot.slane %v1069_v39, %v1239_v36  ;;  %v164_v57 = vrot.slane %v1077_v49, %v1239_v36  ;;  %v1080_v1 = vld [vmem:[#allocation5 + $0x148] sm:$0xff]  }
  0x37   :  { %954 = vmatpush3.bf16.msra.mxu0 %v1047_v13  ;;  %v171_v45 = vrot.slane %v1071_v40, %v1239_v36  ;;  %v1075_v47 = vld [vmem:[#allocation2 + $0x4] ss:$14 sps:$4 sm:$0xff]   ;;  %v1076_v48 = vld [vmem:[#allocation2 + $0x20] ss:$14 sps:$4 sm:$0xff]   ;;  %v1081_v6 = vld [vmem:[#allocation5 + $0x108] sm:$0xff]  }
  0x38   :  { %955 = vmatprep.subr.bf16.mxu0 %v1050_v16  ;;  %v109_v50 = vcombine.high %v86_v41, %v100_v43  ;;  %v108_v52 = vcombine.low %v86_v41, %v100_v43  ;;  %v1078_v54 = vld [vmem:[#allocation2 + $0x58] ss:$14 sps:$4 sm:$0xff]   ;;  %v93_v55 = vrot.slane %v1075_v47, %v1239_v36  ;;  %v107_v56 = vrot.slane %v1076_v48, %v1239_v36  ;;  %v1086_v11 = vld [vmem:[#allocation5 + $0x160] sm:$0xff]   ;;  %v1104_v26 = vld [vmem:[#allocation2 + $0x5c] ss:$14 sps:$4 sm:$0xff]  }
  0x39   :  { %976 = vmatpush3.bf16.msra.mxu1 %v1049_v15  ;;  %v180_v51 = vcombine.high %v157_v44, %v171_v45  ;;  %v179_v53 = vcombine.low %v157_v44, %v171_v45  ;;  %v178_v61 = vrot.slane %v1078_v54, %v1239_v36  ;;  %v1082_v7 = vld [vmem:[#allocation5 + $0x150] sm:$0xff]   ;;  %v1084_v9 = vld [vmem:[#allocation5 + $0x158] sm:$0xff]   ;;  %v1094_v13 = vld [vmem:[#allocation5 + $0x180] sm:$0xff]  }
  0x3a   :  { %977 = vmatprep.subr.bf16.mxu1 %v1052_v18  ;;  %v111_v63 = vcombine.high %v93_v55, %v107_v56  ;;  %v110_v0 = vcombine.low %v93_v55, %v107_v56  ;;  %v1083_v8 = vld [vmem:[#allocation5 + $0x110] sm:$0xff]   ;;  %v1085_v10 = vld [vmem:[#allocation5 + $0x118] sm:$0xff]   ;;  %v1088_v14 = vld [vmem:[#allocation5 + $0x168] sm:$0xff]  }
  0x3b   :  { %956 = vmatpush3.bf16.msra.mxu0 %v1051_v17  ;;  %v233_v59 = vpack.c.bf16 %v180_v51, %v109_v50  ;;  %v232_v60 = vpack.c.bf16 %v179_v53, %v108_v52  ;;  %v182_v2 = vcombine.high %v164_v57, %v178_v61  ;;  %v181_v3 = vcombine.low %v164_v57, %v178_v61  ;;  %v1095_v15 = vld [vmem:[#allocation2 + $0x8] ss:$14 sps:$4 sm:$0xff]   ;;  %v1097_v16 = vld [vmem:[#allocation2 + $0xc] ss:$14 sps:$4 sm:$0x33]   ;;  %v1091_v37 = vld [vmem:[#allocation5 + $0x130] sm:$0xff]  }
  0x3c   :  { %957 = vmatprep.subr.bf16.mxu0 %v1054_v20  ;;  %v1098_v17 = vld [vmem:[#allocation2 + $0x24] ss:$14 sps:$4 sm:$0xff]   ;;  %v1100_v18 = vld [vmem:[#allocation2 + $0x28] ss:$14 sps:$4 sm:$0x33]   ;;  %v129_v20 = vrot.slane %v1097_v16, %v1239_v36 }
  0x3d   :  { %978 = vmatpush3.bf16.msra.mxu1 %v1053_v19  ;;  %674 = vmatprep.mubr.bf16.mxu0 %v233_v59  ;;  %v235_v4 = vpack.c.bf16 %v182_v2, %v111_v63  ;;  %v234_v5 = vpack.c.bf16 %v181_v3, %v110_v0  ;;  %v122_v19 = vrot.slane %v1095_v15, %v1239_v36  ;;  %v1092_v40 = vld [vmem:[#allocation5 + $0x178] sm:$0xff]   ;;  %v891_v47 = vld [vmem:[%s1275_s2] ss:$0 sm:$0xff] }
  0x3e   :  { %979 = vmatprep.subr.bf16.mxu1 %v1056_v22  ;;  %v1103_v22 = vld [vmem:[#allocation2 + $0x44] ss:$14 sps:$4 sm:$0x33]   ;;  %v136_v24 = vrot.slane %v1098_v17, %v1239_v36  ;;  %v143_v25 = vrot.slane %v1100_v18, %v1239_v36  ;;  %v1093_v45 = vld [vmem:[#allocation5 + $0x138] sm:$0xff]  }
  0x3f   :  { %958 = vmatpush3.bf16.msra.mxu0 %v1055_v21  ;;  %715 = vmatprep.mubr.bf16.mxu1 %v235_v4  ;;  %v1101_v21 = vld [vmem:[#allocation2 + $0x40] ss:$14 sps:$4 sm:$0xff]   ;;  %v1188_v4 = vmov 1966171168  }
  0x40   :  { %959 = vmatprep.subr.bf16.mxu0 %v1058_v27  ;;  %v1106_v27 = vld [vmem:[#allocation2 + $0x60] ss:$14 sps:$4 sm:$0x33]   ;;  %v145_v31 = vcombine.high %v122_v19, %v136_v24  ;;  %v144_v43 = vcombine.low %v122_v19, %v136_v24 }
  0x41   :  { %980 = vmatpush3.bf16.msra.mxu1 %v1057_v23  ;;  %v1089_v23 = vld [vmem:[#allocation5 + $0x128] sm:$0xff]  }
  0x42   :  { %981 = vmatprep.subr.bf16.mxu1 %v1060_v29  ;;  %v193_v29 = vrot.slane %v1101_v21, %v1239_v36 }
  0x43   :  { %960 = vmatpush3.bf16.msra.mxu0 %v1059_v28  ;;  %v1090_v28 = vld [vmem:[#allocation5 + $0x170] sm:$0xff]  }
  0x44   :  { %961 = vmatprep.subr.bf16.mxu0 %v1062_v33  ;;  %v207_v33 = vrot.slane %v1104_v26, %v1239_v36 }
  0x45   :  { %982 = vmatpush3.bf16.msra.mxu1 %v1061_v30  ;;  %v200_v30 = vrot.slane %v1103_v22, %v1239_v36 }
  0x46   :  { %983 = vmatprep.subr.bf16.mxu1 %v1064_v35  ;;  %v146_v35 = vcombine.low %v129_v20, %v143_v25  ;;  %v216_v38 = vcombine.high %v193_v29, %v207_v33  ;;  %v215_v44 = vcombine.low %v193_v29, %v207_v33 }
  0x47   :  { %962 = vmatpush3.bf16.msra.mxu0 %v1063_v34  ;;  %v214_v34 = vrot.slane %v1106_v27, %v1239_v36 }
  0x48   :  { %991 = vmatprep.subr.bf16.mxu0 %v1074_v46  ;;  %v237_v41 = vpack.c.bf16 %v216_v38, %v145_v31  ;;  %v236_v46 = vpack.c.bf16 %v215_v44, %v144_v43 }
  0x49   :  { %984 = vmatpush3.bf16.msra.mxu1 %v1073_v42  ;;  %v217_v39 = vcombine.low %v200_v30, %v214_v34 }
  0x4a   :  { %1015 = vmatprep.subr.bf16.mxu1 %v1186_v58  ;;  %675 = vmatmul.mubr.bf16.vlgmr.msra.gmra.mrb[0].mxu0 %v232_v60 }
  0x4b   :  { %992 = vmatpush3.bf16.msra.mxu0 %v1079_v62  ;;  %v238_v42 = vpack.c.bf16 %v217_v39, %v146_v35  ;;  %756 = vmatprep.mubr.bf16.mxu0 %v237_v41 }
  0x4c   :  { %993 = vmatprep.subr.bf16.mxu0 %v1080_v1  ;;  %716 = vmatmul.mubr.bf16.vlgmr.msra.gmra.mrb[0].mxu1 %v234_v5  ;;  %v810_v5 = vunpack.c.l.s4 %v1188_v4 }
  0x4d   :  { %1017 = vmatprep.mubr.msk.bf16.mxu1 %vm1187_vm0, %v1186_v58  ;;  %1016 = vmatpush3.bf16.msra.mxu1 %v1094_v13 }
  0x4f   :  { %994 = vmatpush3.bf16.msra.mxu0 %v1081_v6 }
  0x50   :  { %995 = vmatprep.subr.bf16.mxu0 %v1082_v7 }
  0x53   :  { %996 = vmatpush3.bf16.msra.mxu0 %v1083_v8 }
  0x54   :  { %997 = vmatprep.subr.bf16.mxu0 %v1084_v9  ;;  %1018 = vmatmul.mubr.msk.bf16.vlgmr.msra.gmra.mrb[4].mxu1 %vm638_vm1, %v238_v42 }
  0x57   :  { %998 = vmatpush3.bf16.msra.mxu0 %v1085_v10 }
  0x58   :  { %999 = vmatprep.subr.bf16.mxu0 %v1086_v11 }
  0x5b   :  { %1000 = vmatpush3.bf16.msra.mxu0 %v1087_v12  ;;  %v811_v12 = vunpack.c.0.s8 %v810_v5 }
  0x5c   :  { %1001 = vmatprep.subr.bf16.mxu0 %v1088_v14 }
  0x5d   :  { %v814_v16 = vsub.s32 %v811_v12, %v1236_v32 }
  0x5f   :  { %1002 = vmatpush3.bf16.msra.mxu0 %v1089_v23 }
  0x60   :  { %1003 = vmatprep.subr.bf16.mxu0 %v1090_v28 }
  0x63   :  { %1004 = vmatpush3.bf16.msra.mxu0 %v1091_v37 }
  0x64   :  { %1005 = vmatprep.subr.bf16.mxu0 %v1092_v40 }
  0x67   :  { %1006 = vmatpush3.bf16.msra.mxu0 %v1093_v45 }
  0x6a   :  { %757 = vmatmul.mubr.bf16.vlgmr.msra.gmra.mrb[4].mxu0 %v236_v46 }
 0x11d   :  { %v963_v36 = vpop.f32.mrb[0].mxu0 }
 0x11e   :  { %v964_v48 = vpop.f32.mrb[1].mxu0 }
 0x11f   :  { %v965_v49 = vadd.f32 %v964_v48, %v963_v36  ;;  %v966_v50 = vpop.f32.mrb[2].mxu0  ;;  %v985_v53 = vpop.f32.mrb[0].mxu1 }
 0x120   :  { %v967_v51 = vpop.f32.mrb[3].mxu0  ;;  %v986_v55 = vpop.f32.mrb[1].mxu1 }
 0x121   :  { %v677_v52 = vadd.f32 %v965_v49, %v891_v47  ;;  %v968_v54 = vadd.f32 %v967_v51, %v966_v50  ;;  %v987_v57 = vadd.f32 %v986_v55, %v985_v53  ;;  %v988_v58 = vpop.f32.mrb[2].mxu1 }
 0x122   :  { %v989_v59 = vpop.f32.mrb[3].mxu1 }
 0x123   :  { %v680_v56 = vadd.f32 %v968_v54, %v891_v47  ;;  %v718_v60 = vadd.f32 %v987_v57, %v677_v52  ;;  %v990_v61 = vadd.f32 %v989_v59, %v988_v58 }
 0x125   :  { %v721_v62 = vadd.f32 %v990_v61, %v680_v56 }
 0x127   :  { %v799_v63 = vpop.f32.mrb[4].mxu1 }
 0x128   :  { %v1019_v0 = vpop.f32.mrb[5].mxu1 }
 0x129   :  { %v802_v1 = vpop.f32.mrb[6].mxu1 }
 0x12a   :  { %v1020_v2 = vpop.f32.mrb[7].mxu1 }
 0x13d   :  { %v1007_v3 = vpop.f32.mrb[4].mxu0 }
 0x13e   :  { %v1008_v6 = vpop.f32.mrb[5].mxu0 }
 0x13f   :  { %v1009_v7 = vadd.f32 %v1008_v6, %v1007_v3  ;;  %v1010_v8 = vpop.f32.mrb[6].mxu0 }
 0x140   :  { %v1011_v9 = vpop.f32.mrb[7].mxu0 }
 0x141   :  { %v759_v10 = vadd.f32 %v1009_v7, %v718_v60  ;;  %v1012_v11 = vadd.f32 %v1011_v9, %v1010_v8 }
 0x143   :  { %v800_v13 = vadd.f32 %v799_v63, %v759_v10  ;;  %v762_v14 = vadd.f32 %v1012_v11, %v721_v62 }
 0x145   :  { %v803_v15 = vadd.f32 %v802_v1, %v762_v14 }
 0x147   :  { %v806_v17 = vpack.c.bf16 %v803_v15, %v800_v13  ;;  %v942_v18 = vpack.c.bf16 %v803_v15, %v803_v15 }
 0x149   :  { %v815_v19 = vrot.slane %v806_v17, %v814_v16  ;;  %v822_v20 = vrot.slane %v942_v18, %v814_v16 }
 0x14b   :  { %v823_v21 = vcombine.high %v815_v19, %v815_v19  ;;  %v824_v22 = vcombine.high %v822_v20, %v822_v20  ;;  %v831_v23 = vrot.slane %v815_v19, %v814_v16  ;;  %v838_v24 = vrot.slane %v822_v20, %v814_v16  ;;  %943 = vst.sshfl [vmem:[#allocation7] sm:$0x1 pattern:$0x73625140] %v815_v19 }
 0x14c   :  { %945 = vst.sshfl [vmem:[#allocation7 + $0x4] sm:$0x1 pattern:$0x73625140] %v822_v20 }
 0x14d   :  { %v845_v25 = vrot.slane %v823_v21, %v814_v16  ;;  %v852_v26 = vrot.slane %v824_v22, %v814_v16  ;;  %v853_v27 = vcombine.high %v831_v23, %v831_v23  ;;  %v854_v28 = vcombine.high %v838_v24, %v838_v24  ;;  %944 = vst.sshfl [vmem:[#allocation7 + $0x1] sm:$0x1 pattern:$0x73625140] %v823_v21 }
 0x14e   :  { %946 = vst.sshfl [vmem:[#allocation7 + $0x5] sm:$0x1 pattern:$0x73625140] %v824_v22 }
 0x14f   :  { %v855_v29 = vcombine.high %v845_v25, %v845_v25  ;;  %v856_v30 = vcombine.high %v852_v26, %v852_v26  ;;  %867 = vst [vmem:[#allocation7 + $0x2] sm:$0x1] %v853_v27  ;;  %871 = vst [vmem:[#allocation7 + $0x6] sm:$0x1] %v854_v28 }
 0x151   :  { %868 = vst [vmem:[#allocation7 + $0x3] sm:$0x1] %v855_v29  ;;  %872 = vst [vmem:[#allocation7 + $0x7] sm:$0x1] %v856_v30 }
 0x152   :  { %877 = vsyncadd [#allocation4], 112  ;;  %s1189_s2 = smov [#allocation7]  }
 0x153   :  { %s878_s14 = sshll.u32 %s1189_s2, 4  ;;  %s879_s14 = int_to_ptr.vmem [resolvable:$true] %s878_s14 }
 0x154   :  { %s1151_s15 = scalar_lea.vmem %s879_s14, 16  ;;  %s1155_s16 = scalar_lea.vmem %s879_s14, 128 }
 0x155   :  { %p1152_p2 = scmp.ne.s32.totalorder %s879_s14, %s1151_s15  ;;  %p1156_p3 = scmp.lt.s32.totalorder %s879_s14, %s879_s14 }
 0x156   :  { %p1157_p4 = scmp.lt.s32.totalorder %s1155_s16, %s1151_s15 }
 0x158   :  { %p1158_p5 = por %p1157_p4, %p1156_p3 }
 0x15a   :  { %p1159_p6 = pnand %p1158_p5, %p1152_p2 }
 0x15c   :  { %1162 = shalt.err (!%p1159_p6)
}
 0x15d   :  { %s1163_s19 = scalar_lea.hbm %s1276_s3, 16 }
 0x15e   :  { %p1164_p7 = scmp.ne.s32.totalorder %s1276_s3, %s1163_s19  ;;  %p1167_p8 = scmp.lt.u32.totalorder %s1163_s19, %s1276_s3 }
 0x160   :  { %p1169_p9 = pnand %p1167_p8, %p1164_p7 }
 0x162   :  { %1172 = shalt.err (!%p1169_p9)
}
 0x163   :  { %s1190_s24 = smov 16   ;;  %s1191_s25 = smov 1  }
 0x164   :  { %884 = dma.vmem_to_hbm [thread:$0]  %s879_s14, 16, %s1276_s3, [#allocation4], %s1190_s24, %s1190_s24, %s1191_s25  }
 0x165   :  { %1177 = dma.done.wait [#allocation4], 128  }
 0x166   :  { %1178 = vsyncadd [#allocation4], 4294967168 }
 0x167   :  { %888 = vsyncpa [#allocation3], 1 }
 0x168   :  { %889 = vsyncpa [#allocation6], 1 }
 0x169   :  { %890 = vsyncpa [#allocation4], 1 }

</bundles_post_ra>
